<compile_context>
chip_gen: v7x
topology: tpu7x:2x2x1
jax: 0.10.0
libtpu: 0.0.40
codegen_flags: <defaults>
</compile_context>

<pallas_src>
import functools

import jax
import jax.numpy as jnp
from jax.experimental import pallas as pl
from jax.experimental.pallas import tpu as pltpu


# --------------------------------------------------------------------------- tunables
_VMEM_LIMIT_BYTES = 32 * 1024 * 1024      # safe on v5e/v6e/v7x; > v5e's 16 MiB default
_BLOCK_BUDGET_BYTES = 12 * 1024 * 1024    # double-buffered in+out blocks per grid step
_KRON_MAX_WEIGHT_ELEMS = 1 << 18          # use fused path while kron weight <= 1 MiB f32


def _interp_matrix(out_size: int, in_size: int, dtype=jnp.float32):
    """Interpolation matrix M (out_size, in_size) s.t. y = M @ x matches
    torch.nn.functional.interpolate(mode='bilinear', align_corners=False) on one axis."""
    if out_size == in_size:
        return jnp.eye(out_size, dtype=dtype)
    scale = in_size / out_size
    dst = jnp.arange(out_size, dtype=jnp.float32)
    src = (dst + 0.5) * scale - 0.5
    src = jnp.maximum(src, 0.0)                      # PyTorch clamps negative src to 0
    i0 = jnp.floor(src).astype(jnp.int32)
    i0 = jnp.minimum(i0, in_size - 1)
    i1 = jnp.minimum(i0 + 1, in_size - 1)
    w1 = src - i0.astype(jnp.float32)
    w0 = 1.0 - w1
    rows = jnp.arange(out_size)
    m = jnp.zeros((out_size, in_size), jnp.float32)
    m = m.at[rows, i0].add(w0)
    m = m.at[rows, i1].add(w1)
    return m.astype(dtype)


def _pick_batch(total_rows: int, row_bytes: int, *, sublane_align: bool) -> int:
    """Rows (planes) per grid step: fill the VMEM block budget, keep >=2 grid steps
    when possible (v7x has 2 TensorCores), and keep the second-minor block dim
    8-aligned when the batch dim is the block's second-minor dim (2-D fused path)."""
    b = max(1, _BLOCK_BUDGET_BYTES // max(int(row_bytes), 1))
    if total_rows > 1:
        b = min(b, pl.cdiv(total_rows, 2))
    b = min(b, total_rows)
    if sublane_align and b < total_rows:
        b = (b // 8) * 8 or min(8, total_rows)
    return max(1, min(b, total_rows))


# --------------------------------------------------------------------------- kernels
def _resize_fused_kernel(w_ref, x_ref, o_ref):
    # w: (h_in*w_in, h_out*w_out) = kron(Wh, Ww).T, pre-transposed in the wrapper
    # x: (B, h_in*w_in) flattened planes; o: (B, h_out*w_out) flattened planes.
    o_ref[...] = jnp.dot(
        x_ref[...], w_ref[...], preferred_element_type=jnp.float32
    ).astype(o_ref.dtype)


def _resize_separable_kernel(*refs, skip_h: bool, skip_w: bool):
    it = iter(refs)
    wh_ref = None if skip_h else next(it)     # (h_out, h_in)
    wwt_ref = None if skip_w else next(it)    # (w_in, w_out), already transposed
    x_ref = next(it)                          # (B, h_in, w_in)
    o_ref = next(it)                          # (B, h_out, w_out)

    b, h_in, w_in = x_ref.shape
    t = x_ref[...]

    if not skip_w:
        w_out = wwt_ref.shape[1]
        if h_in % 8 == 0:
            # Fold the batch into the matmul M dimension: one (B*h_in, w_in) @
            # (w_in, w_out) matmul. The reshapes are layout-preserving (h_in % 8 == 0).
            t = jnp.dot(t.reshape(b * h_in, w_in), wwt_ref[...],
                        preferred_element_type=jnp.float32)
            t = t.reshape(b, h_in, w_out)
        else:
            wwt_b = jnp.broadcast_to(wwt_ref[...], (b, w_in, w_out))
            t = jnp.einsum('bhw,bwp->bhp', t, wwt_b,
                           preferred_element_type=jnp.float32)

    if not skip_h:
        h_out = wh_ref.shape[0]
        wh_b = jnp.broadcast_to(wh_ref[...], (b, h_out, h_in))
        # TODO(synk): if the batched matmul ever becomes the MXU bottleneck, fold the
        # batch into N ((h_out, h_in) @ (h_in, B*w)) via one in-block transpose.
        t = jnp.einsum('boh,bhw->bow', wh_b, t,
                       preferred_element_type=jnp.float32)

    o_ref[...] = t.astype(o_ref.dtype)


# --------------------------------------------------------------------------- wrapper
@functools.partial(jax.jit, static_argnames=("resolution", "mode"))
def resize(x, resolution, mode="bilinear"):
    """Pallas equivalent of vitmvt Resize.forward. x: (N, C, H, W)."""
    if mode != "bilinear":
        # TODO(synk): only 'bilinear' (the module default) is implemented; other
        # F.interpolate modes (nearest/bicubic/...) are not translated here.
        raise NotImplementedError(mode)

    if isinstance(resolution, (tuple, list)):
        h_out, w_out = resolution
    else:
        h_out, w_out = resolution, resolution

    n, c, h_in, w_in = x.shape
    if (h_in, w_in) == (h_out, w_out):
        return x                               # same no-op as the module

    nc = n * c
    esize = jnp.dtype(x.dtype).itemsize
    # bf16 weights when the data is bf16 (halves weight traffic, bf16 MXU rate);
    # accumulation stays f32 via preferred_element_type.
    wdtype = jnp.bfloat16 if x.dtype == jnp.bfloat16 else jnp.float32
    wsize = jnp.dtype(wdtype).itemsize
    i_in, i_out = h_in * w_in, h_out * w_out

    # ---------------- fused (Kronecker) path: small planes, single big matmul -------
    if i_in * i_out <= _KRON_MAX_WEIGHT_ELEMS:
        wh = _interp_matrix(h_out, h_in)
        ww = _interp_matrix(w_out, w_in)
        w_kron = jnp.kron(wh, ww).T.astype(wdtype)          # (i_in, i_out), pre-transposed

        x2 = x.reshape(nc, i_in)                            # free reshape (row-major NCHW)
        row_bytes = 2 * (i_in + i_out) * esize              # double-buffered in+out rows
        bblk = _pick_batch(nc, row_bytes, sublane_align=True)

        cost = pl.CostEstimate(
            flops=2 * nc * i_in * i_out,
            transcendentals=0,
            bytes_accessed=nc * (i_in + i_out) * esize + i_in * i_out * wsize)

        out2 = pl.pallas_call(
            _resize_fused_kernel,
            out_shape=jax.ShapeDtypeStruct((nc, i_out), x.dtype),
            grid_spec=pltpu.PrefetchScalarGridSpec(
                num_scalar_prefetch=0,
                grid=(pl.cdiv(nc, bblk),),
                in_specs=[
                    pl.BlockSpec((i_in, i_out), lambda i: (0, 0)),   # weight (resident)
                    pl.BlockSpec((bblk, i_in), lambda i: (i, 0)),    # B flattened planes
                ],
                out_specs=pl.BlockSpec((bblk, i_out), lambda i: (i, 0)),
            ),
            compiler_params=pltpu.CompilerParams(
                dimension_semantics=("parallel",),
                vmem_limit_bytes=_VMEM_LIMIT_BYTES),
            cost_estimate=cost,
        )(w_kron, x2)
        return out2.reshape(n, c, h_out, w_out)

    # ---------------- separable path: large planes ----------------------------------
    # TODO(synk): for very large up-sampling factors, band Wh/Ww over the output dim
    # (scalar-prefetched row offsets) instead of dense (h_out, h_in) weights.
    skip_h = h_in == h_out
    skip_w = w_in == w_out

    weights = []
    in_specs = []
    weight_bytes = 0
    if not skip_h:
        wh = _interp_matrix(h_out, h_in).astype(wdtype)              # (h_out, h_in)
        weights.append(wh)
        in_specs.append(pl.BlockSpec((h_out, h_in), lambda i: (0, 0)))
        weight_bytes += h_out * h_in * wsize
    if not skip_w:
        wwt = _interp_matrix(w_out, w_in).T.astype(wdtype)           # (w_in, w_out)
        weights.append(wwt)
        in_specs.append(pl.BlockSpec((w_in, w_out), lambda i: (0, 0)))
        weight_bytes += w_in * w_out * wsize

    row_bytes = 2 * (h_in * w_in + h_out * w_out) * esize            # double-buffered blocks
    row_bytes += h_in * w_out * 4                                    # f32 intermediate/plane
    bblk = _pick_batch(nc, row_bytes, sublane_align=False)

    x3 = x.reshape(nc, h_in, w_in)
    in_specs.append(pl.BlockSpec((bblk, h_in, w_in), lambda i: (i, 0, 0)))

    flops = 0
    if not skip_w:
        flops += 2 * nc * h_in * w_in * w_out
    if not skip_h:
        flops += 2 * nc * h_out * h_in * w_out
    cost = pl.CostEstimate(
        flops=flops, transcendentals=0,
        bytes_accessed=nc * (h_in * w_in + h_out * w_out) * esize + weight_bytes)

    kernel = functools.partial(_resize_separable_kernel, skip_h=skip_h, skip_w=skip_w)

    out3 = pl.pallas_call(
        kernel,
        out_shape=jax.ShapeDtypeStruct((nc, h_out, w_out), x.dtype),
        grid_spec=pltpu.PrefetchScalarGridSpec(
            num_scalar_prefetch=0,
            grid=(pl.cdiv(nc, bblk),),
            in_specs=in_specs,
            out_specs=pl.BlockSpec((bblk, h_out, w_out), lambda i: (i, 0, 0)),
        ),
        compiler_params=pltpu.CompilerParams(
            dimension_semantics=("parallel",),
            vmem_limit_bytes=_VMEM_LIMIT_BYTES),
        cost_estimate=cost,
    )(*weights, x3)
    return out3.reshape(n, c, h_out, w_out)


# --------------------------------------------------------------------------- reference
def _reference(x, resolution):
    """Pure-JAX reference of bilinear interpolate (align_corners=False)."""
    if isinstance(resolution, (tuple, list)):
        h_out, w_out = resolution
    else:
        h_out, w_out = resolution, resolution
    _, _, h_in, w_in = x.shape
    wh = _interp_matrix(h_out, h_in)
    ww = _interp_matrix(w_out, w_in)
    return jnp.einsum("oh,nchw,pw->ncop", wh, x.astype(jnp.float32), ww).astype(x.dtype)


if __name__ == "__main__":
    key = jax.random.PRNGKey(0)
    x = jax.random.normal(key, (2, 4, 16, 16), dtype=jnp.float32)

    # 1) small-plane (fused Kronecker) path: 16x16 -> 8x8
    out = jax.block_until_ready(resize(x, 8, mode="bilinear"))
    assert out.shape == (2, 4, 8, 8), out.shape
    assert out.dtype == x.dtype
    assert jnp.allclose(out, _reference(x, 8), atol=1e-5, rtol=1e-5)

    # 2) identity path (no resize) returns the input unchanged
    same = jax.block_until_ready(resize(x, 16))
    assert jnp.array_equal(same, x)

    # 3) large-plane (separable) path: 64x64 -> 40x40
    x2 = jax.random.normal(jax.random.PRNGKey(0), (1, 2, 64, 64), dtype=jnp.float32)
    out2 = jax.block_until_ready(resize(x2, (40, 40)))
    assert out2.shape == (1, 2, 40, 40), out2.shape
    assert jnp.allclose(out2, _reference(x2, (40, 40)), atol=1e-5, rtol=1e-5)

    # 4) single-axis resize on the separable path (identity matmul skipped)
    out3 = jax.block_until_ready(resize(x2, (64, 40)))
    assert out3.shape == (1, 2, 64, 40), out3.shape
    assert jnp.allclose(out3, _reference(x2, (64, 40)), atol=1e-5, rtol=1e-5)

    print("KERNEL_OK")
</pallas_src>

<mosaic_0001>
module attributes {stable_mosaic.version = 11 : i64} {
  func.func @_resize_fused_kernel(%arg0: i32, %arg1: memref<256x64xf32, #tpu.memory_space<vmem>>, %arg2: memref<8x256xf32, #tpu.memory_space<vmem>>, %arg3: memref<8x64xf32, #tpu.memory_space<vmem>>) attributes {dimension_semantics = [#tpu.dimension_semantics<parallel>], iteration_bounds = array<i64: 1>, scalar_prefetch = 0 : i64, scratch_operands = 0 : i64, tpu.core_type = #tpu.core_type<tc>, window_params = [{pipeline_mode = #tpu.pipeline_mode<synchronous>, transform_indices = @transform_0, window_bounds = array<i64: 256, 64>}, {transform_indices = @transform_1, window_bounds = array<i64: 8, 256>}, {transform_indices = @transform_2, window_bounds = array<i64: 8, 64>}]} {
    %c0 = arith.constant 0 : index
    %c0_0 = arith.constant 0 : index
    %0 = vector.load %arg2[%c0, %c0_0] : memref<8x256xf32, #tpu.memory_space<vmem>>, vector<8x256xf32>
    %c0_1 = arith.constant 0 : index
    %c0_2 = arith.constant 0 : index
    %1 = vector.load %arg1[%c0_1, %c0_2] : memref<256x64xf32, #tpu.memory_space<vmem>>, vector<256x64xf32>
    %cst = arith.constant dense<0.000000e+00> : vector<8x64xf32>
    %2 = tpu.matmul %0, %1, %cst {dimension_numbers = #tpu.dot_dimension_numbers<[1], [0], [0], [1], [0, 0, 1, 1], [], []>} : vector<8x256xf32>, vector<256x64xf32>, vector<8x64xf32> -> vector<8x64xf32>
    %c0_3 = arith.constant 0 : index
    %c0_4 = arith.constant 0 : index
    %3 = vector.load %arg3[%c0_3, %c0_4] : memref<8x64xf32, #tpu.memory_space<vmem>>, vector<8x64xf32>
    tpu.vector_store %arg3[%c0_3, %c0_4], %2 {strides = array<i32>} : memref<8x64xf32, #tpu.memory_space<vmem>>, vector<8x64xf32>,
    return
  }
  func.func @transform_0(%arg0: i32) -> (i32, i32) {
    %c0_i32 = arith.constant 0 : i32
    %c0_i32_0 = arith.constant 0 : i32
    %c0_i32_1 = arith.constant 0 : i32
    return %c0_i32, %c0_i32_0 : i32, i32
  }
  func.func @transform_1(%arg0: i32) -> (i32, i32) {
    %c0_i32 = arith.constant 0 : i32
    %c0_i32_0 = arith.constant 0 : i32
    return %arg0, %c0_i32 : i32, i32
  }
  func.func @transform_2(%arg0: i32) -> (i32, i32) {
    %c0_i32 = arith.constant 0 : i32
    %c0_i32_0 = arith.constant 0 : i32
    return %arg0, %c0_i32 : i32, i32
  }
}

</mosaic_0001>

<bundles_post_ra>
// kernel: resize.1
= control target key start
LH: loop header
LB: loop body
LE: loop exit
PB: predicated region body
PF: predicated region fallthrough
CT: control target
= control target key end

     0   :  { %vm115_vm0 = vcmask 523264   ;;  %s308_s0 = inlined_call_operand.vmem [shape: f32[256,64], index: 0, kind: input, shape index: {}]   ;;  %s309_s1 = inlined_call_operand.vmem [shape: f32[8,256], index: 1, kind: input, shape index: {}]   ;;  %s310_s2 = inlined_call_operand.vmem [shape: f32[8,64], index: 2, kind: output, shape index: {}]  }
   0x1   :  { %v29_v0 = vld [vmem:[%s308_s0 + $0x80] sm:$0xff]  ;;  %v30_v1 = vld [vmem:[%s308_s0 + $0x88] sm:$0xff]  ;;  %v31_v5 = vld [vmem:[%s308_s0 + $0x90] sm:$0xff] }
   0x2   :  { %v13_v2 = vld [vmem:[%s308_s0] sm:$0xff]  ;;  %v156_v3 = vpack.c.bf16 %v30_v1, %v29_v0  ;;  %v14_v4 = vld [vmem:[%s308_s0 + $0x8] sm:$0xff]  ;;  %v32_v6 = vld [vmem:[%s308_s0 + $0x98] sm:$0xff] }
   0x3   :  { %v158_v7 = vpack.c.bf16 %v14_v4, %v13_v2  ;;  %v160_v8 = vpack.c.bf16 %v32_v6, %v31_v5  ;;  %v15_v9 = vld [vmem:[%s308_s0 + $0x10] sm:$0xff]  ;;  %v16_v10 = vld [vmem:[%s308_s0 + $0x18] sm:$0xff]  ;;  %v33_v11 = vld [vmem:[%s308_s0 + $0xa0] sm:$0xff] }
   0x4   :  { %157 = vmatprep.subr.bf16.mxu0 %v156_v3  ;;  %v34_v12 = vld [vmem:[%s308_s0 + $0xa8] sm:$0xff]  ;;  %v162_v13 = vpack.c.bf16 %v16_v10, %v15_v9  ;;  %v17_v15 = vld [vmem:[%s308_s0 + $0x20] sm:$0xff]  ;;  %v35_v17 = vld [vmem:[%s308_s0 + $0xb0] sm:$0xff] }
   0x5   :  { %159 = vmatpush3.bf16.msra.mxu0 %v158_v7  ;;  %v164_v14 = vpack.c.bf16 %v34_v12, %v33_v11  ;;  %v18_v16 = vld [vmem:[%s308_s0 + $0x28] sm:$0xff]  ;;  %v36_v18 = vld [vmem:[%s308_s0 + $0xb8] sm:$0xff]  ;;  %v19_v21 = vld [vmem:[%s308_s0 + $0x30] sm:$0xff] }
   0x6   :  { %161 = vmatprep.subr.bf16.mxu0 %v160_v8  ;;  %v166_v19 = vpack.c.bf16 %v18_v16, %v17_v15  ;;  %v168_v20 = vpack.c.bf16 %v36_v18, %v35_v17  ;;  %v20_v22 = vld [vmem:[%s308_s0 + $0x38] sm:$0xff]  ;;  %v37_v23 = vld [vmem:[%s308_s0 + $0xc0] sm:$0xff]  ;;  %v38_v24 = vld [vmem:[%s308_s0 + $0xc8] sm:$0xff] }
   0x7   :  { %v12_v25 = vld [vmem:[%s309_s1 + $0x8] sm:$0xff]  ;;  %v170_v26 = vpack.c.bf16 %v20_v22, %v19_v21  ;;  %v172_v27 = vpack.c.bf16 %v38_v24, %v37_v23  ;;  %v21_v28 = vld [vmem:[%s308_s0 + $0x40] sm:$0xff]  ;;  %v39_v30 = vld [vmem:[%s308_s0 + $0xd0] sm:$0xff] }
   0x8   :  { %109 = vmatprep.mubr.f32.mxu0 %v12_v25  ;;  %v22_v29 = vld [vmem:[%s308_s0 + $0x48] sm:$0xff]  ;;  %v40_v31 = vld [vmem:[%s308_s0 + $0xd8] sm:$0xff]  ;;  %v23_v34 = vld [vmem:[%s308_s0 + $0x50] sm:$0xff] }
   0x9   :  { %163 = vmatpush3.bf16.msra.mxu0 %v162_v13  ;;  %v174_v32 = vpack.c.bf16 %v22_v29, %v21_v28  ;;  %v176_v33 = vpack.c.bf16 %v40_v31, %v39_v30  ;;  %v24_v35 = vld [vmem:[%s308_s0 + $0x58] sm:$0xff]  ;;  %v41_v36 = vld [vmem:[%s308_s0 + $0xe0] sm:$0xff]  ;;  %v42_v37 = vld [vmem:[%s308_s0 + $0xe8] sm:$0xff] }
   0xa   :  { %165 = vmatprep.subr.bf16.mxu0 %v164_v14  ;;  %v178_v38 = vpack.c.bf16 %v24_v35, %v23_v34  ;;  %v180_v39 = vpack.c.bf16 %v42_v37, %v41_v36  ;;  %v25_v40 = vld [vmem:[%s308_s0 + $0x60] sm:$0xff]  ;;  %v26_v41 = vld [vmem:[%s308_s0 + $0x68] sm:$0xff]  ;;  %v43_v42 = vld [vmem:[%s308_s0 + $0xf0] sm:$0xff] }
   0xb   :  { %v44_v43 = vld [vmem:[%s308_s0 + $0xf8] sm:$0xff]  ;;  %v182_v44 = vpack.c.bf16 %v26_v41, %v25_v40  ;;  %v27_v46 = vld [vmem:[%s308_s0 + $0x70] sm:$0xff]  ;;  %v11_v49 = vld [vmem:[%s309_s1] sm:$0xff] }
   0xc   :  { %v184_v45 = vpack.c.bf16 %v44_v43, %v43_v42  ;;  %v28_v47 = vld [vmem:[%s308_s0 + $0x78] sm:$0xff] }
   0xd   :  { %167 = vmatpush3.bf16.msra.mxu0 %v166_v19  ;;  %v186_v48 = vpack.c.bf16 %v28_v47, %v27_v46 }
   0xe   :  { %169 = vmatprep.subr.bf16.mxu0 %v168_v20 }
  0x11   :  { %171 = vmatpush3.bf16.msra.mxu0 %v170_v26 }
  0x12   :  { %173 = vmatprep.subr.bf16.mxu0 %v172_v27 }
  0x15   :  { %175 = vmatpush3.bf16.msra.mxu0 %v174_v32 }
  0x16   :  { %177 = vmatprep.subr.bf16.mxu0 %v176_v33 }
  0x19   :  { %179 = vmatpush3.bf16.msra.mxu0 %v178_v38 }
  0x1a   :  { %181 = vmatprep.subr.bf16.mxu0 %v180_v39 }
  0x1d   :  { %183 = vmatpush3.bf16.msra.mxu0 %v182_v44 }
  0x1e   :  { %185 = vmatprep.subr.bf16.mxu0 %v184_v45 }
  0x21   :  { %187 = vmatpush3.bf16.msra.mxu0 %v186_v48 }
  0x24   :  { %110 = vmatmul.mubr.f32.vlgmr.msra.gmra.mrb[0].mxu0 %v11_v49 }
  0xf7   :  { %v153_v50 = vpop.f32.mrb[0].mxu0 }
  0xf8   :  { %v154_v51 = vpop.f32.mrb[1].mxu0 }
  0xf9   :  { %v155_v52 = vadd.f32 %v154_v51, %v153_v50 }
  0xfb   :  { %116 = vst.msk [vmem:[%s310_s2] sm:$0xff] %vm115_vm0, %v155_v52 }

</bundles_post_ra>
